<compile_context>
chip_gen: v7x
topology: tpu7x:2x2x1
jax: 0.10.0
libtpu: 0.0.40
codegen_flags: <defaults>
</compile_context>

<pallas_src>
import math

import jax
import jax.numpy as jnp
from jax import lax
from jax.experimental import pallas as pl
from jax.experimental.pallas import tpu as pltpu


def _round_up(a, m):
    return (a + m - 1) // m * m


def _cdiv(a, b):
    return (a + b - 1) // b


def _vmem_capacity_bytes():
    """Per-core VMEM capacity; conservative 64 MiB fallback (v7x per-TC)."""
    try:
        info = pltpu.get_tpu_info()
        cap = getattr(info, "vmem_capacity_bytes", None)
        if cap:
            return int(cap)
    except Exception:
        pass
    return 64 * 1024 * 1024


# --------------------------------------------------------------------------
# Kernels
# --------------------------------------------------------------------------
def _shifted_matmul_kernel(x_ref, xh_ref, w_ref, b_ref, o_ref):
    """stride==1 path: K accumulating matmuls over shifted column windows.

    x_ref  : (Cin_g, L_TILE)    main input tile (bf16)
    xh_ref : (Cin_g, 128)       halo columns right of the tile (same array)
    w_ref  : (K, Cout_g, Cin_g) pre-scaled weight, resident across b/L tiles
    b_ref  : (Cout_g, 1)        bias column (f32)
    o_ref  : (Cout_g, L_TILE)   lane-dense output tile
    """
    l_tile = o_ref.shape[-1]
    k = w_ref.shape[0]
    xw = jnp.concatenate([x_ref[...], xh_ref[...]], axis=-1)  # (Cin_g, L_TILE+128)
    acc = jnp.dot(w_ref[0], xw[:, :l_tile], preferred_element_type=jnp.float32)
    for kk in range(1, k):
        acc = acc + jnp.dot(w_ref[kk], xw[:, kk:kk + l_tile],
                            preferred_element_type=jnp.float32)
    o_ref[...] = (acc + b_ref[...].astype(jnp.float32)).astype(o_ref.dtype)


def _im2col_matmul_kernel(x_ref, w_ref, b_ref, o_ref):
    """stride>1 path: single MXU matmul on tap-stacked columns.

    x_ref : (K*Cin_g, L_TILE); w_ref : (Cout_g, K*Cin_g); b_ref : (Cout_g, 1)
    """
    acc = jnp.dot(w_ref[...], x_ref[...], preferred_element_type=jnp.float32)
    o_ref[...] = (acc + b_ref[...].astype(jnp.float32)).astype(o_ref.dtype)


# --------------------------------------------------------------------------
# Wrapper
# --------------------------------------------------------------------------
def equal_conv1d(x, weight, bias, *, scale, stride=1, padding=0, groups=1,
                 compute_dtype=jnp.bfloat16, l_tile_max=2048,
                 vmem_budget_bytes=None):
    """Forward pass of EqualConv1d.  x: (N, C_in, L)."""
    n, c_in, l = x.shape
    c_out, cin_g, k = weight.shape
    assert c_in == cin_g * groups
    assert c_out % groups == 0
    cout_g = c_out // groups

    l_out = (l + 2 * padding - k) // stride + 1
    assert l_out >= 1

    out_dtype = x.dtype
    cdtype = jnp.dtype(compute_dtype) if compute_dtype is not None else jnp.dtype(x.dtype)
    cbytes = cdtype.itemsize
    obytes = jnp.dtype(out_dtype).itemsize

    # Generation-aware VMEM bookkeeping: cap the scoped limit well under the
    # per-core capacity (v7x: 64 MiB -> 48 MiB; v5e/v6e: 128 MiB -> 96-100 MiB)
    # and size tiles against a budget below that.
    vmem_cap = _vmem_capacity_bytes()
    vmem_limit = int(min(vmem_cap * 3 // 4, 100 * 1024 * 1024))
    if vmem_budget_bytes is None:
        vmem_budget_bytes = int(vmem_limit * 0.7)

    if bias is None:
        bias = jnp.zeros((c_out,), jnp.float32)
    b_col = bias.reshape(groups, cout_g, 1).astype(jnp.float32)

    cin8 = _round_up(cin_g, 8)
    cout8 = _round_up(cout_g, 8)
    l_tile_max = max(128, (l_tile_max // 128) * 128)

    def _pick_tiles(block_bytes):
        n_t = _cdiv(l_out, l_tile_max)
        lt = _round_up(_cdiv(l_out, n_t), 128)
        while lt > 128 and block_bytes(lt) > vmem_budget_bytes:
            lt -= 128
        n_t = _cdiv(l_out, lt)
        # Megacore (v7x): keep >=2 blocks on some parallel axis when possible.
        if groups == 1 and n == 1 and n_t == 1 and l_out > 128:
            lt = _round_up(_cdiv(l_out, 2), 128)
            n_t = _cdiv(l_out, lt)
        return lt, n_t

    # TODO(synk): for very short L_out / tiny Cout_g, fold several batch
    # elements into the lane axis instead of iterating batch in the grid.

    if stride == 1 and k <= 129:
        # ---------------- shifted-window path (no im2col) ----------------
        cinl = _round_up(cin_g, 128)
        w_t = (weight.astype(jnp.float32) * scale).astype(cdtype)
        w_t = w_t.reshape(groups, cout_g, cin_g, k).transpose(0, 3, 1, 2)  # (g,K,Cout_g,Cin_g)

        def block_bytes(lt):
            b = 2 * cin8 * lt * cbytes              # x main (double-buffered)
            b += 2 * cin8 * 128 * cbytes            # x halo
            b += 2 * cout8 * lt * obytes            # output tiles
            b += 2 * k * cout8 * cinl * cbytes      # weight (Pallas double-buffers it)
            b += 2 * cout8 * 128 * 4                # bias
            # in-kernel temporaries: concat slab, per-tap slice, f32 accumulator
            b += cin8 * (lt + 128) * cbytes + cin8 * lt * cbytes + cout8 * lt * 4
            return b

        l_tile, n_l_tiles = _pick_tiles(block_bytes)
        l_padded = n_l_tiles * l_tile
        lt128 = l_tile // 128

        # Pad x so every main tile plus its 128-column halo is in range; pad
        # columns are zero so they never pollute real outputs.
        l_tot = l_padded + 128
        xg = x.reshape(n, groups, cin_g, l).astype(cdtype)
        x_p = jnp.pad(xg, ((0, 0), (0, 0), (0, 0),
                           (padding, l_tot - l - padding)))

        flops = 2 * n * groups * cout_g * cin_g * k * l_padded
        bytes_accessed = (x_p.size * cbytes
                          + n * groups * cin_g * 128 * n_l_tiles * cbytes   # halo re-reads
                          + w_t.size * cbytes + b_col.size * 4
                          + n * groups * cout_g * l_padded * obytes)

        out4 = pl.pallas_call(
            _shifted_matmul_kernel,
            out_shape=jax.ShapeDtypeStruct((n, groups, cout_g, l_padded), out_dtype),
            grid_spec=pltpu.PrefetchScalarGridSpec(
                num_scalar_prefetch=0,
                # groups outermost -> weight/bias blocks resident across (b, lt).
                grid=(groups, n, n_l_tiles),
                in_specs=[
                    pl.BlockSpec((None, None, cin_g, l_tile),
                                 lambda g, b, t: (b, g, 0, t)),
                    pl.BlockSpec((None, None, cin_g, 128),
                                 lambda g, b, t: (b, g, 0, (t + 1) * lt128)),
                    pl.BlockSpec((None, k, cout_g, cin_g),
                                 lambda g, b, t: (g, 0, 0, 0)),
                    pl.BlockSpec((None, cout_g, 1),
                                 lambda g, b, t: (g, 0, 0)),
                ],
                out_specs=pl.BlockSpec((None, None, cout_g, l_tile),
                                       lambda g, b, t: (b, g, 0, t)),
            ),
            compiler_params=pltpu.CompilerParams(
                dimension_semantics=("parallel", "parallel", "parallel"),
                vmem_limit_bytes=vmem_limit),
            cost_estimate=pl.CostEstimate(flops=flops, transcendentals=0,
                                          bytes_accessed=bytes_accessed),
        )(x_p, x_p, w_t, b_col)

    else:
        # ---------------- strided im2col path (stride > 1) ----------------
        kcin = k * cin_g
        kcin8 = _round_up(kcin, 8)
        kcinl = _round_up(kcin, 128)

        w_flat = (weight.astype(jnp.float32) * scale).astype(cdtype)
        w_flat = w_flat.reshape(groups, cout_g, kcin)        # contraction = (cin, k)

        x_pad = jnp.pad(x, ((0, 0), (0, 0), (padding, padding))).astype(cdtype)
        taps = [x_pad[:, :, kk: kk + stride * (l_out - 1) + 1: stride]
                for kk in range(k)]
        x_im = jnp.stack(taps, axis=2).reshape(n, groups, kcin, l_out)

        def block_bytes(lt):
            b = 2 * kcin8 * lt * cbytes             # x tiles (double-buffered)
            b += 2 * cout8 * lt * obytes            # output tiles
            b += 2 * cout8 * kcinl * cbytes         # weight (double-buffered)
            b += 2 * cout8 * 128 * 4                # bias
            b += cout8 * lt * 4                     # f32 accumulator temp
            return b

        l_tile, n_l_tiles = _pick_tiles(block_bytes)
        l_padded = n_l_tiles * l_tile
        if l_padded != l_out:
            x_im = jnp.pad(x_im, ((0, 0), (0, 0), (0, 0), (0, l_padded - l_out)))

        flops = 2 * n * groups * cout_g * kcin * l_padded
        bytes_accessed = (x_im.size * cbytes + w_flat.size * cbytes
                          + b_col.size * 4
                          + n * groups * cout_g * l_padded * obytes)

        out4 = pl.pallas_call(
            _im2col_matmul_kernel,
            out_shape=jax.ShapeDtypeStruct((n, groups, cout_g, l_padded), out_dtype),
            grid_spec=pltpu.PrefetchScalarGridSpec(
                num_scalar_prefetch=0,
                grid=(groups, n, n_l_tiles),
                in_specs=[
                    pl.BlockSpec((None, None, kcin, l_tile),
                                 lambda g, b, t: (b, g, 0, t)),
                    pl.BlockSpec((None, cout_g, kcin),
                                 lambda g, b, t: (g, 0, 0)),
                    pl.BlockSpec((None, cout_g, 1),
                                 lambda g, b, t: (g, 0, 0)),
                ],
                out_specs=pl.BlockSpec((None, None, cout_g, l_tile),
                                       lambda g, b, t: (b, g, 0, t)),
            ),
            compiler_params=pltpu.CompilerParams(
                dimension_semantics=("parallel", "parallel", "parallel"),
                vmem_limit_bytes=vmem_limit),
            cost_estimate=pl.CostEstimate(flops=flops, transcendentals=0,
                                          bytes_accessed=bytes_accessed),
        )(x_im, w_flat, b_col)

    # Free reshape (adjacent axes) + slice off lane padding.
    return out4.reshape(n, c_out, l_padded)[:, :, :l_out]


# --------------------------------------------------------------------------
# Parameter construction mirroring EqualConv1d.__init__
# --------------------------------------------------------------------------
def init_equal_conv1d_params(key, in_channel, out_channel, kernel_size,
                             groups=1, bias=True, bias_init=0.0,
                             c=1.0, w=1.0, init='normal', lr_mul=1.0):
    wkey, _ = jax.random.split(key)
    shape = (out_channel, in_channel // groups, kernel_size)
    if init == 'normal':
        weight = jax.random.normal(wkey, shape, jnp.float32) / lr_mul
    elif init == 'uniform':
        weight = jax.random.uniform(wkey, shape, jnp.float32, -1.0, 1.0) / lr_mul
    else:
        raise ValueError()
    scale = w * (c ** 0.5) / math.sqrt(in_channel / groups * kernel_size) * lr_mul
    b = jnp.full((out_channel,), bias_init, jnp.float32) if bias else None
    return weight, b, scale


def _reference(x, weight, bias, scale, stride, padding, groups):
    ref = lax.conv_general_dilated(
        x, weight * scale, window_strides=(stride,),
        padding=[(padding, padding)],
        dimension_numbers=('NCH', 'OIH', 'NCH'),
        feature_group_count=groups)
    if bias is not None:
        ref = ref + bias[None, :, None]
    return ref


if __name__ == "__main__":
    key = jax.random.PRNGKey(0)
    TOL = dict(atol=2e-2, rtol=2e-2)   # bf16 MXU inputs, f32 accumulation

    # ---- config A: groups=1, stride=1 (shifted-window path) ----
    kx, kp, key = jax.random.split(key, 3)
    N, C_IN, C_OUT, L, K = 2, 4, 8, 16, 3
    stride, padding, groups = 1, 1, 1
    x = jax.random.normal(kx, (N, C_IN, L), jnp.float32)
    weight, bias, scale = init_equal_conv1d_params(
        kp, C_IN, C_OUT, K, groups=groups, bias=True, bias_init=0.1)
    out = jax.block_until_ready(
        equal_conv1d(x, weight, bias, scale=scale,
                     stride=stride, padding=padding, groups=groups))
    ref = _reference(x, weight, bias, scale, stride, padding, groups)
    assert out.shape == ref.shape == (N, C_OUT, (L + 2 * padding - K) // stride + 1)
    assert jnp.allclose(out, ref, **TOL)

    # ---- config B: groups=2, stride=2, K=5 (im2col path) ----
    kx2, kp2, key = jax.random.split(key, 3)
    N2, C_IN2, C_OUT2, L2, K2 = 2, 8, 8, 16, 5
    stride2, padding2, groups2 = 2, 2, 2
    x2 = jax.random.normal(kx2, (N2, C_IN2, L2), jnp.float32)
    weight2, bias2, scale2 = init_equal_conv1d_params(
        kp2, C_IN2, C_OUT2, K2, groups=groups2, bias=True, bias_init=-0.2)
    out2 = jax.block_until_ready(
        equal_conv1d(x2, weight2, bias2, scale=scale2,
                     stride=stride2, padding=padding2, groups=groups2))
    ref2 = _reference(x2, weight2, bias2, scale2, stride2, padding2, groups2)
    assert out2.shape == ref2.shape
    assert jnp.allclose(out2, ref2, **TOL)

    # ---- config C: stride=1, L spanning multiple L-tiles (exercises halo) ----
    kx3, kp3, key = jax.random.split(key, 3)
    N3, C_IN3, C_OUT3, L3, K3 = 1, 8, 8, 300, 3
    stride3, padding3, groups3 = 1, 1, 1
    x3 = jax.random.normal(kx3, (N3, C_IN3, L3), jnp.float32)
    weight3, bias3, scale3 = init_equal_conv1d_params(
        kp3, C_IN3, C_OUT3, K3, groups=groups3, bias=True, bias_init=0.05)
    out3 = jax.block_until_ready(
        equal_conv1d(x3, weight3, bias3, scale=scale3,
                     stride=stride3, padding=padding3, groups=groups3))
    ref3 = _reference(x3, weight3, bias3, scale3, stride3, padding3, groups3)
    assert out3.shape == ref3.shape
    assert jnp.allclose(out3, ref3, **TOL)

    print("KERNEL_OK")
</pallas_src>

<mosaic_0001>
module attributes {stable_mosaic.version = 11 : i64} {
  func.func @_shifted_matmul_kernel(%arg0: i32, %arg1: i32, %arg2: i32, %arg3: memref<1x1x4x128xbf16, #tpu.memory_space<vmem>>, %arg4: memref<1x1x4x128xbf16, #tpu.memory_space<vmem>>, %arg5: memref<1x3x8x4xbf16, #tpu.memory_space<vmem>>, %arg6: memref<1x8x1xf32, #tpu.memory_space<vmem>>, %arg7: memref<1x1x8x128xf32, #tpu.memory_space<vmem>>) attributes {dimension_semantics = [#tpu.dimension_semantics<parallel>, #tpu.dimension_semantics<parallel>, #tpu.dimension_semantics<parallel>], iteration_bounds = array<i64: 1, 2, 1>, scalar_prefetch = 0 : i64, scratch_operands = 0 : i64, tpu.core_type = #tpu.core_type<tc>, window_params = [{transform_indices = @transform_0, window_bounds = array<i64: 1, 1, 4, 128>}, {transform_indices = @transform_1, window_bounds = array<i64: 1, 1, 4, 128>}, {transform_indices = @transform_2, window_bounds = array<i64: 1, 3, 8, 4>}, {transform_indices = @transform_3, window_bounds = array<i64: 1, 8, 1>}, {transform_indices = @transform_4, window_bounds = array<i64: 1, 1, 8, 128>}]} {
    %c0 = arith.constant 0 : index
    %c0_0 = arith.constant 0 : index
    %c0_1 = arith.constant 0 : index
    %c0_2 = arith.constant 0 : index
    %0 = vector.load %arg3[%c0, %c0_0, %c0_1, %c0_2] : memref<1x1x4x128xbf16, #tpu.memory_space<vmem>>, vector<1x1x4x128xbf16>
    %1 = vector.shape_cast %0 : vector<1x1x4x128xbf16> to vector<4x128xbf16>
    %c0_3 = arith.constant 0 : index
    %c0_4 = arith.constant 0 : index
    %c0_5 = arith.constant 0 : index
    %c0_6 = arith.constant 0 : index
    %2 = vector.load %arg4[%c0_3, %c0_4, %c0_5, %c0_6] : memref<1x1x4x128xbf16, #tpu.memory_space<vmem>>, vector<1x1x4x128xbf16>
    %3 = vector.shape_cast %2 : vector<1x1x4x128xbf16> to vector<4x128xbf16>
    %4 = tpu.concatenate %1, %3 in 1 : vector<4x128xbf16>, vector<4x128xbf16> -> vector<4x256xbf16>
    %c0_7 = arith.constant 0 : index
    %c0_8 = arith.constant 0 : index
    %c0_9 = arith.constant 0 : index
    %c0_10 = arith.constant 0 : index
    %5 = vector.load %arg5[%c0_7, %c0_8, %c0_9, %c0_10] : memref<1x3x8x4xbf16, #tpu.memory_space<vmem>>, vector<1x1x8x4xbf16>
    %6 = vector.shape_cast %5 : vector<1x1x8x4xbf16> to vector<8x4xbf16>
    %7 = vector.extract_strided_slice %4 {offsets = [0, 0], sizes = [4, 128], strides = [1, 1]} : vector<4x256xbf16> to vector<4x128xbf16>
    %cst = arith.constant dense<0.000000e+00> : vector<8x128xf32>
    %8 = tpu.matmul %6, %7, %cst {dimension_numbers = #tpu.dot_dimension_numbers<[1], [0], [0], [1], [0, 0, 1, 1], [], []>} : vector<8x4xbf16>, vector<4x128xbf16>, vector<8x128xf32> -> vector<8x128xf32>
    %c0_11 = arith.constant 0 : index
    %c1 = arith.constant 1 : index
    %c0_12 = arith.constant 0 : index
    %c0_13 = arith.constant 0 : index
    %9 = vector.load %arg5[%c0_11, %c1, %c0_12, %c0_13] : memref<1x3x8x4xbf16, #tpu.memory_space<vmem>>, vector<1x1x8x4xbf16>
    %10 = vector.shape_cast %9 : vector<1x1x8x4xbf16> to vector<8x4xbf16>
    %11 = vector.extract_strided_slice %4 {offsets = [0, 1], sizes = [4, 128], strides = [1, 1]} : vector<4x256xbf16> to vector<4x128xbf16>
    %cst_14 = arith.constant dense<0.000000e+00> : vector<8x128xf32>
    %12 = tpu.matmul %10, %11, %cst_14 {dimension_numbers = #tpu.dot_dimension_numbers<[1], [0], [0], [1], [0, 0, 1, 1], [], []>} : vector<8x4xbf16>, vector<4x128xbf16>, vector<8x128xf32> -> vector<8x128xf32>
    %13 = arith.addf %8, %12 : vector<8x128xf32>
    %c0_15 = arith.constant 0 : index
    %c2 = arith.constant 2 : index
    %c0_16 = arith.constant 0 : index
    %c0_17 = arith.constant 0 : index
    %14 = vector.load %arg5[%c0_15, %c2, %c0_16, %c0_17] : memref<1x3x8x4xbf16, #tpu.memory_space<vmem>>, vector<1x1x8x4xbf16>
    %15 = vector.shape_cast %14 : vector<1x1x8x4xbf16> to vector<8x4xbf16>
    %16 = vector.extract_strided_slice %4 {offsets = [0, 2], sizes = [4, 128], strides = [1, 1]} : vector<4x256xbf16> to vector<4x128xbf16>
    %cst_18 = arith.constant dense<0.000000e+00> : vector<8x128xf32>
    %17 = tpu.matmul %15, %16, %cst_18 {dimension_numbers = #tpu.dot_dimension_numbers<[1], [0], [0], [1], [0, 0, 1, 1], [], []>} : vector<8x4xbf16>, vector<4x128xbf16>, vector<8x128xf32> -> vector<8x128xf32>
    %18 = arith.addf %13, %17 : vector<8x128xf32>
    %c0_19 = arith.constant 0 : index
    %c0_20 = arith.constant 0 : index
    %c0_21 = arith.constant 0 : index
    %19 = vector.load %arg6[%c0_19, %c0_20, %c0_21] : memref<1x8x1xf32, #tpu.memory_space<vmem>>, vector<1x8x1xf32>
    %20 = vector.shape_cast %19 : vector<1x8x1xf32> to vector<8x1xf32>
    %21 = vector.broadcast %20 : vector<8x1xf32> to vector<8x128xf32>
    %22 = arith.addf %18, %21 : vector<8x128xf32>
    %c0_22 = arith.constant 0 : index
    %c0_23 = arith.constant 0 : index
    %c0_24 = arith.constant 0 : index
    %c0_25 = arith.constant 0 : index
    %23 = vector.load %arg7[%c0_22, %c0_23, %c0_24, %c0_25] : memref<1x1x8x128xf32, #tpu.memory_space<vmem>>, vector<1x1x8x128xf32>
    %24 = vector.shape_cast %23 : vector<1x1x8x128xf32> to vector<8x128xf32>
    %25 = vector.shape_cast %22 : vector<8x128xf32> to vector<1x1x8x128xf32>
    tpu.vector_store %arg7[%c0_22, %c0_23, %c0_24, %c0_25], %25 {strides = array<i32>} : memref<1x1x8x128xf32, #tpu.memory_space<vmem>>, vector<1x1x8x128xf32>,
    return
  }
  func.func @transform_0(%arg0: i32, %arg1: i32, %arg2: i32) -> (i32, i32, i32, i32) {
    %c0_i32 = arith.constant 0 : i32
    %c0_i32_0 = arith.constant 0 : i32
    return %arg1, %arg0, %c0_i32, %arg2 : i32, i32, i32, i32
  }
  func.func @transform_1(%arg0: i32, %arg1: i32, %arg2: i32) -> (i32, i32, i32, i32) {
    %c1_i32 = arith.constant 1 : i32
    %0 = arith.addi %arg2, %c1_i32 : i32
    %c1_i32_0 = arith.constant 1 : i32
    %1 = arith.muli %0, %c1_i32_0 : i32
    %c0_i32 = arith.constant 0 : i32
    %c0_i32_1 = arith.constant 0 : i32
    return %arg1, %arg0, %c0_i32, %1 : i32, i32, i32, i32
  }
  func.func @transform_2(%arg0: i32, %arg1: i32, %arg2: i32) -> (i32, i32, i32, i32) {
    %c0_i32 = arith.constant 0 : i32
    %c0_i32_0 = arith.constant 0 : i32
    %c0_i32_1 = arith.constant 0 : i32
    %c0_i32_2 = arith.constant 0 : i32
    return %arg0, %c0_i32, %c0_i32_0, %c0_i32_1 : i32, i32, i32, i32
  }
  func.func @transform_3(%arg0: i32, %arg1: i32, %arg2: i32) -> (i32, i32, i32) {
    %c0_i32 = arith.constant 0 : i32
    %c0_i32_0 = arith.constant 0 : i32
    %c0_i32_1 = arith.constant 0 : i32
    return %arg0, %c0_i32, %c0_i32_0 : i32, i32, i32
  }
  func.func @transform_4(%arg0: i32, %arg1: i32, %arg2: i32) -> (i32, i32, i32, i32) {
    %c0_i32 = arith.constant 0 : i32
    %c0_i32_0 = arith.constant 0 : i32
    return %arg1, %arg0, %c0_i32, %arg2 : i32, i32, i32, i32
  }
}

</mosaic_0001>

<bundles_post_ra>
// kernel: tpu_custom_call.1
= control target key start
LH: loop header
LB: loop body
LE: loop exit
PB: predicated region body
PF: predicated region fallthrough
CT: control target
= control target key end

     0   :  { %9 = vsyncpa [#allocation3], 0  ;;  %s1015_s0 = inlined_call_operand.vmem [shape: bf16[2,1,4,256], index: 0, kind: input, shape index: {}]   ;;  %s1016_s1 = inlined_call_operand.vmem [shape: bf16[2,1,4,256], index: 1, kind: input, shape index: {}]   ;;  %s1017_s2 = inlined_call_operand.vmem [shape: bf16[1,3,8,4], index: 2, kind: input, shape index: {}]   ;;  %s1018_s3 = inlined_call_operand.vmem [shape: f32[1,8,1], index: 3, kind: input, shape index: {}]   ;;  %s1019_s4 = inlined_call_operand.hbm [shape: f32[2,1,8,128], index: 4, kind: output, shape index: {}]  }
   0x1   :  { %11 = vsyncpa [#allocation3 + $0x1], 0  ;;  %s879_s15 = smov 0   ;;  %s881_s16 = smov 0  }
   0x2   :  { %s883_s17 = smov 0   ;;  %s885_s18 = smov 0  }
   0x3   :  { %s887_s19 = smov 0   ;;  %s889_s20 = smov 0  }
   0x4 LB: > { %s658_s21 = sadd.s32 4294967295, %s846_s20   ;;  %s659_s22 = sadd.s32 4294967294, %s846_s20   ;;  %s846_s20 = sphi %s889_s20, %s17_s20   ;;  %s842_s19 = sphi %s887_s19, %s1026_s19   ;;  %s838_s18 = sphi %s885_s18, %s1025_s18   ;;  %s834_s17 = sphi %s883_s17, %s1024_s17   ;;  %s830_s16 = sphi %s881_s16, %s1023_s16   ;;  %s826_s15 = sphi %s879_s15, %s1022_s15  }
   0x5   : > { %s32_s23 = sadd.s32 1, %s842_s19  ;;  %s161_s24 = sadd.s32 1, %s834_s17 }
   0x6   : > { %p34_p0 = scmp.ge.s32.totalorder %s32_s23, 2  ;;  %p171_p1 = scmp.ne.s32.totalorder %s834_s17, %s830_s16 }
   0x7   : > { %p172_p2 = scmp.eq.s32.totalorder %s658_s21, 1  ;;  %p177_p3 = scmp.ne.s32.totalorder %s830_s16, %s826_s15 }
   0x8   : > { %s1028_s23 = smov (%p34_p0, %s32_s23), 0  ;;  %p178_p5 = scmp.eq.s32.totalorder %s659_s22, 1 }
   0x9   : > { %p919_p4 = por %p172_p2, %p171_p1  ;;  %s154_s26 = ssub.s32 %s842_s19, %s1028_s23 }
   0xa   : > { %p664_p6 = scmp.ge.s32.totalorder %s846_s20, 1  ;;  %p159_p7 = scmp.eq.s32.totalorder %s154_s26, 0 }
   0xb   : > { %p926_p8 = por %p178_p5, %p177_p3  ;;  %p243_p9 = scmp.lt.s32.totalorder %s846_s20, 3 }
   0xc   : > { %s932_s28 = scalar_select %p159_p7, %s834_s17, %s161_s24  }
   0xd   : > { %p244_p10 = pnand %p664_p6, %p243_p9 }
   0xe   : > { %p298_p11 = scmp.lt.s32.totalorder (!%p244_p10), %s838_s18, 1  ;;  %v848_v0 = vmov (!%p244_p10), 0.0   ;;  %vm849_vm0 = vmmov (!%p244_p10), 0   ;;  %vm351_vm1 = vcmask (!%p244_p10), 1041408   ;;  %s850_s12 = smov (!%p244_p10), 126   ;;  %vm347_vm2 = vcmask (!%p244_p10), 31744  }
   0xf   : > { %247 = sbr.rel (%p244_p10) target bundleno = 389 (0x185), region = 36  ;;  %689 = vmatprep.subr.bf16.mxu0 (!%p244_p10), %v848_v0  ;;  %695 = vmatprep.subr.bf16.mxu1 (!%p244_p10), %v848_v0  ;;  %s851_s13 = smov (!%p244_p10), 127   ;;  %v336_v4 = vld [vmem:[%s1017_s2] sm:$0xf] (!%p244_p10)  ;;  %v852_v5 = vmov (!%p244_p10), 0   ;;  %vm447_vm3 = vcmask (!%p244_p10), 1031168  }
  0x10   : > { %691 = vmatprep.mubr.msk.bf16.mxu0 (!%p244_p10), %vm849_vm0, %v848_v0  ;;  %697 = vmatprep.mubr.msk.bf16.mxu1 (!%p244_p10), %vm849_vm0, %v848_v0  ;;  %v496_v6 = vld [vmem:[%s1018_s3] sm:$0xff] (!%p244_p10)  ;;  %vm345_vm4 = vcmask (!%p244_p10), 1039360   ;;  %v673_v16 = vld [vmem:[%s1017_s2 + $0x8] sm:$0xf] (!%p244_p10)  ;;  %s295_s6 = sand.u32 (!%p244_p10), 1, %s830_s16   ;;  %s853_s21 = smov (!%p244_p10), [#allocation2]  }
  0x11   : > { %767 = vset.pattern.permute.xlu0 (!%p244_p10), %v852_v5  ;;  %v670_v14 = vld [vmem:[%s1017_s2 + $0x4] sm:$0xf] (!%p244_p10)  ;;  %s505_s14 = scalar_lea.sflag (!%p244_p10), [#allocation3], %s295_s6  ;;  %s772_s22 = sshll.u32 (!%p244_p10), %s853_s21, 4  ;;  %s773_s22 = int_to_ptr.vmem [resolvable:$false] %s772_s22 }
  0x12   : > { %s774_s24 = scalar_lea.vmem (!%p244_p10), %s773_s22, 256 }
  0x16   : > { %s299_s29 = scalar_select %p298_p11, %s838_s18, 1 }
  0x18   : > { %s679_s30 = sshll.u32 %s299_s29, 2 }
  0x19   : > { %s309_s7 = scalar_lea.vmem %s1015_s0, %s679_s30  ;;  %s681_s8 = sadd.s32 2, %s679_s30 }
  0x1a   : > { %v334_v1 = vld [vmem:[%s309_s7] sm:$0x3]  ;;  %s322_s11 = scalar_lea.vmem %s1016_s1, %s681_s8  ;;  %s665_s7 = sshll.u32 %s295_s6, 3 }
  0x1b   : > { %443 = vrot.lane.b32.xlu1 %v334_v1, %s850_s12  ;;  %341 = vrot.lane.b32.xlu0 %v334_v1, %s851_s13  ;;  %v399_v2 = vsel %vm351_vm1, %v334_v1, 0  ;;  %v335_v3 = vld [vmem:[%s322_s11] sm:$0x3]  ;;  %s676_s8 = sshll.u32 %s838_s18, 7  ;;  %s297_s9 = scalar_lea.vmem [#allocation2], %s665_s7 }
  0x1c   : > { %696 = vmatpush3.bf16.msra.mxu1 %v399_v2  ;;  %s520_s10 = sshll.u32 %s297_s9, 4  ;;  %s970_s10 = int_to_ptr.vmem [resolvable:$true] %s520_s10 }
  0x1d   : > { %s768_s18 = scalar_lea.vmem %s970_s10, 128  ;;  %p775_p1 = scmp.lt.s32.totalorder %s970_s10, %s773_s22 }
  0x1e   : > { %p769_p12 = scmp.ne.s32.totalorder %s970_s10, %s768_s18  ;;  %p776_p2 = scmp.lt.s32.totalorder %s774_s24, %s768_s18 }
  0x1f   : > { %445 = vrot.lane.b32.xlu1 %v335_v3, %s850_s12  ;;  %343 = vrot.lane.b32.xlu0 %v335_v3, %s851_s13  ;;  %s968_s13 = scalar_lea.hbm %s1019_s4, %s676_s8 }
  0x20   : > { %698 = vmatmul.mubr.msk.bf16.vlgmr.msra.gmra.mrb[0].mxu1 %vm347_vm2, %v336_v4  ;;  %p770_p13 = pnand %p769_p12, %p919_p4  ;;  %p777_p3 = por %p776_p2, %p775_p1 }
  0x22   : > { %p771_p0 = pneg %p770_p13 }
  0x23   : > { %499 = vperm.xlu0 %767, %v496_v6  }
  0x24   : > { %p778_p5 = pnand %p777_p3, %p771_p0 }
  0x8d   : > { %v444_v7 = vpop.permute.xlu1 %443  ;;  %v342_v8 = vpop.permute.xlu0 %341 }
  0x91   : > { %v446_v9 = vpop.permute.xlu1 %445  ;;  %v344_v10 = vpop.permute.xlu0 %343 }
  0x92   : > { %v448_v11 = vsel %vm447_vm3, %v444_v7, %v446_v9  ;;  %v346_v12 = vsel %vm345_vm4, %v342_v8, %v344_v10 }
  0x93   : > { %v353_v13 = vsel %vm351_vm1, %v346_v12, 0  ;;  %v453_v15 = vsel %vm351_vm1, %v448_v11, 0 }
  0x94   : > { %690 = vmatpush3.bf16.msra.mxu0 %v353_v13 }
  0x95   : > { %701 = vmatprep.subr.bf16.mxu0 %v848_v0 }
  0x97   : > { %692 = vmatmul.mubr.msk.bf16.vlgmr.msra.gmra.mrb[0].mxu0 %vm347_vm2, %v670_v14 }
  0x98   : > { %702 = vmatpush3.bf16.msra.mxu0 %v453_v15  ;;  %703 = vmatprep.mubr.msk.bf16.mxu0 %vm849_vm0, %v848_v0 }
  0x9f   : > { %704 = vmatmul.mubr.msk.bf16.vlgmr.msra.gmra.mrb[4].mxu0 %vm347_vm2, %v673_v16 }
  0xa2   : > { %v500_v27 = vpop.permute.xlu0 %499 }
  0xf3   : > { %v435_v17 = vpop.f32.mrb[0].mxu1 }
  0xf4   : > { %v699_v18 = vpop.f32.mrb[1].mxu1 }
  0xf5   : > { %v438_v19 = vpop.f32.mrb[2].mxu1 }
  0xf6   : > { %v700_v20 = vpop.f32.mrb[3].mxu1 }
 0x16a   : > { %v389_v21 = vpop.f32.mrb[0].mxu0 }
 0x16b   : > { %v693_v22 = vpop.f32.mrb[1].mxu0  ;;  %v436_v23 = vadd.f32 %v435_v17, %v389_v21 }
 0x16c   : > { %v392_v24 = vpop.f32.mrb[2].mxu0 }
 0x16d   : > { %v694_v25 = vpop.f32.mrb[3].mxu0 }
 0x172   : > { %v489_v26 = vpop.f32.mrb[4].mxu0 }
 0x173   : > { %v495_v28 = vadd.f32 %v489_v26, %v436_v23  ;;  %v705_v29 = vpop.f32.mrb[5].mxu0 }
 0x174   : > { %v492_v30 = vpop.f32.mrb[6].mxu0 }
 0x175   : > { %v502_v31 = vadd.f32 %v500_v27, %v495_v28  ;;  %v706_v32 = vpop.f32.mrb[7].mxu0 }
 0x177   : > { %503 = vst [vmem:[%s297_s9] sm:$0xff] %v502_v31 }
 0x178   : > { %781 = shalt.err (!%p778_p5)
}
 0x179   : > { %s782_s26 = scalar_lea.hbm %s968_s13, 128  ;;  %s786_s5 = scalar_lea.hbm %s1019_s4, 256 }
 0x17a   : > { %p783_p6 = scmp.ne.s32.totalorder %s968_s13, %s782_s26  ;;  %p787_p10 = scmp.lt.u32.totalorder %s968_s13, %s1019_s4 }
 0x17b   : > { %p788_p11 = scmp.lt.u32.totalorder %s786_s5, %s782_s26  ;;  %p790_p13 = scmp.lt.u32.totalorder %s782_s26, %s968_s13 }
 0x17c   : > { %p784_p7 = pnand %p783_p6, %p919_p4 }
 0x17d   : > { %p789_p12 = por %p788_p11, %p787_p10 }
 0x17e   : > { %p785_p9 = pneg %p784_p7 }
 0x17f   : > { %p791_p0 = por %p790_p13, %p789_p12 }
 0x181   : > { %p792_p1 = pnand %p791_p0, %p785_p9 }
 0x183   : > { %795 = shalt.err (!%p792_p1)
}
 0x184   : > { %707 = dma.vmem_to_hbm [thread:$0]  (%p919_p4), %s970_s10, 128, %s968_s13, %s505_s14  }
 0x185 PF: > { %p713_p2 = scmp.ge.s32.totalorder %s846_s20, 2  ;;  %s532_s8 = sand.u32 1, %s826_s15  }
 0x186   : > { %s533_s9 = scalar_lea.sflag [#allocation3], %s532_s8 }
 0x187   : > { %p710_p3 = pnand %p713_p2, %p926_p8 }
 0x189   : > { %821 = dma.done.wait (!%p710_p3), %s533_s9, 128  }
 0x18a   : > { %823 = vsyncadd (!%p710_p3), %s533_s9, 4294967168  ;;  %s17_s20 = sadd.s32 1, %s846_s20   ;;  %s1022_s15 = smov %s830_s16 }
 0x18b   : > { %p14_p5 = scmp.ge.s32.totalorder %s17_s20, 4   ;;  %s1023_s16 = smov %s834_s17 }
 0x18c   : > { %s1024_s17 = smov %s932_s28  ;;  %s1025_s18 = smov %s842_s19 }
 0x18d   : > { %s1026_s19 = smov %s1028_s23  ;;  %16 = sbr.rel (!%p14_p5) target bundleno = 4 (0x4), region = 82 }
 0x194   :  { %538 = vsyncpa [#allocation3], 1 }
 0x195   :  { %540 = vsyncpa [#allocation3 + $0x1], 1 }

</bundles_post_ra>
